<compile_context>
chip_gen: v7x
topology: tpu7x:2x2x1
jax: 0.10.0
libtpu: 0.0.40
codegen_flags: <defaults>
</compile_context>

<pallas_src>
import jax
import jax.numpy as jnp
from jax.experimental import pallas as pl
from jax.experimental.pallas import tpu as pltpu


# --------------------------------------------------------------------------
# Kernel body: identity copy of one lane-dense tile.
# --------------------------------------------------------------------------
def _copy_kernel(x_ref, o_ref):
    o_ref[...] = x_ref[...]


def _sublane_multiple(dtype) -> int:
    # Sub-32-bit dtypes pack along sublanes: f32 -> 8, bf16 -> 16, int8 -> 32.
    itemsize = jnp.dtype(dtype).itemsize
    return 8 * max(1, 4 // itemsize)


# --------------------------------------------------------------------------
# Optional materializing path: tiled, pipelined, sublane/lane-dense copy.
# --------------------------------------------------------------------------
def _flatten_copy_pallas(x2: jax.Array) -> jax.Array:
    b, n = x2.shape
    dtype = x2.dtype
    itemsize = jnp.dtype(dtype).itemsize
    total = b * n
    sub = _sublane_multiple(dtype)

    # Budget for the pipeline's 2-in + 2-out double buffers.  With dense
    # tiles the nominal tile size equals the physical (padded) size, so this
    # accounting is exact.  8 MiB fits v5e's 16 MiB scoped default and v7x's
    # 32 MiB scoped / 64 MiB physical VMEM with headroom.
    vmem_budget = 8 * 1024 * 1024

    # ---- Preferred: re-view the flat data as a dense (M, L) slab. ----------
    slab = None
    if total % (sub * 128) == 0:
        for L in (4096, 2048, 1024, 512, 256, 128):
            if total % L == 0 and (total // L) % sub == 0:
                slab = (total // L, L)
                break

    if slab is not None:
        M, L = slab
        xs = x2.reshape(M, L)                       # metadata-only (contiguous)
        row_bytes = L * itemsize

        # Row tile: a multiple of `sub` that divides M and fits the budget,
        # preferring >= 4 grid steps so the pipeline double-buffers and v7x's
        # two TensorCores both issue DMAs.
        q = M // sub
        divisors = sorted({d for i in range(1, int(q ** 0.5) + 1) if q % i == 0
                           for d in (i, q // i)})
        fitting = [sub * d for d in divisors
                   if 4 * sub * d * row_bytes <= vmem_budget]
        if not fitting:
            fitting = [sub]
        deep = [t for t in fitting if M // t >= 4]
        tm = max(deep) if deep else max(fitting)
        row_steps = M // tm

        # Small arrays: split lanes too, keeping every tile a full multiple of
        # 128 lanes wide (unmasked vst, big contiguous DMAs).
        lane_steps = 1
        target_steps = 4
        while (row_steps * lane_steps < target_steps
               and L % (lane_steps * 2) == 0
               and (L // (lane_steps * 2)) % 128 == 0):
            lane_steps *= 2
        tl = L // lane_steps

        ys = pl.pallas_call(
            _copy_kernel,
            out_shape=jax.ShapeDtypeStruct((M, L), dtype),
            grid=(row_steps, lane_steps),
            in_specs=[pl.BlockSpec((tm, tl), lambda i, j: (i, j))],
            out_specs=pl.BlockSpec((tm, tl), lambda i, j: (i, j)),
            compiler_params=pltpu.CompilerParams(
                # Purely bandwidth-bound identity: independent tiles, lets
                # v7x shard the grid across its two TensorCores (no-op on
                # single-TC v5e/v6e).
                dimension_semantics=("parallel", "parallel"),
                # Explicit limit with headroom; re-derived for v7x's 32 MiB
                # scoped / 64 MiB physical VMEM.
                vmem_limit_bytes=32 * 1024 * 1024,
            ),
        )(xs)
        return ys.reshape(b, n)

    # ---- Rare irregular sizes (total not divisible by sub*128). ------------
    # Lane-chunk the (b, n) view directly; account for sublane padding so the
    # budget math reflects the physical VMEM footprint.
    padded_b = ((b + sub - 1) // sub) * sub
    if n < 128:
        tn, grid = n, (1,)
    else:
        max_tn = max(128, (vmem_budget // (4 * padded_b * itemsize)) // 128 * 128)
        tn = min(max_tn, (n // 128) * 128)
        grid = (pl.cdiv(n, tn),)
    return pl.pallas_call(
        _copy_kernel,
        out_shape=jax.ShapeDtypeStruct((b, n), dtype),
        grid=grid,
        in_specs=[pl.BlockSpec((b, tn), lambda i: (0, i))],
        out_specs=pl.BlockSpec((b, tn), lambda i: (0, i)),
        compiler_params=pltpu.CompilerParams(
            dimension_semantics=("parallel",),
            vmem_limit_bytes=32 * 1024 * 1024,
        ),
    )(x2)


# --------------------------------------------------------------------------
# Public wrapper: torch x.view(x.size(0), -1)
# --------------------------------------------------------------------------
def flatten_pallas(x: jax.Array, *, materialize: bool = False) -> jax.Array:
    """Equivalent of torch's x.view(x.size(0), -1).

    materialize=False (default): pure-metadata reshape, no kernel (fastest).
    materialize=True: explicit HBM copy through the Pallas identity kernel.
    """
    b = x.shape[0]
    n = 1
    for d in x.shape[1:]:
        n *= d
    x2 = x.reshape(b, n)   # row-major reshape == torch .view on contiguous NCHW
    if not materialize:
        return x2
    return _flatten_copy_pallas(x2)


if __name__ == "__main__":
    key = jax.random.PRNGKey(0)
    # Small NCHW input consistent with the module's usage in SSD_HarDNet85.
    x = jax.random.normal(key, (2, 4, 16, 16), dtype=jnp.float32)
    ref = x.reshape(2, -1)

    # Primary path: metadata-only reshape (no kernel launched).
    y = flatten_pallas(x)
    jax.block_until_ready(y)
    assert y.shape == (2, 4 * 16 * 16), y.shape
    assert y.dtype == x.dtype
    assert bool(jnp.array_equal(y, ref)), "mismatch vs reference flatten (view path)"

    # Materializing path: exercises the Pallas identity-copy kernel
    # (sublane/lane-dense (8, 128) tiles, 2 pipelined grid steps here).
    y2 = jax.jit(lambda a: flatten_pallas(a, materialize=True))(x)
    jax.block_until_ready(y2)
    assert y2.shape == (2, 4 * 16 * 16), y2.shape
    assert y2.dtype == x.dtype
    assert bool(jnp.array_equal(y2, ref)), "mismatch vs reference flatten (copy path)"

    print("KERNEL_OK")
</pallas_src>

<mosaic_0001>
module attributes {stable_mosaic.version = 11 : i64} {
  func.func @_copy_kernel(%arg0: i32, %arg1: i32, %arg2: memref<8x128xf32, #tpu.memory_space<vmem>>, %arg3: memref<8x128xf32, #tpu.memory_space<vmem>>) attributes {dimension_semantics = [#tpu.dimension_semantics<parallel>, #tpu.dimension_semantics<parallel>], iteration_bounds = array<i64: 1, 2>, scalar_prefetch = 0 : i64, scratch_operands = 0 : i64, tpu.core_type = #tpu.core_type<tc>, window_params = [{transform_indices = @transform_0, window_bounds = array<i64: 8, 128>}, {transform_indices = @transform_1, window_bounds = array<i64: 8, 128>}]} {
    %c0 = arith.constant 0 : index
    %c0_0 = arith.constant 0 : index
    %0 = vector.load %arg2[%c0, %c0_0] : memref<8x128xf32, #tpu.memory_space<vmem>>, vector<8x128xf32>
    %c0_1 = arith.constant 0 : index
    %c0_2 = arith.constant 0 : index
    %1 = vector.load %arg3[%c0_1, %c0_2] : memref<8x128xf32, #tpu.memory_space<vmem>>, vector<8x128xf32>
    tpu.vector_store %arg3[%c0_1, %c0_2], %0 {strides = array<i32>} : memref<8x128xf32, #tpu.memory_space<vmem>>, vector<8x128xf32>,
    return
  }
  func.func @transform_0(%arg0: i32, %arg1: i32) -> (i32, i32) {
    %c0_i32 = arith.constant 0 : i32
    return %arg0, %arg1 : i32, i32
  }
  func.func @transform_1(%arg0: i32, %arg1: i32) -> (i32, i32) {
    %c0_i32 = arith.constant 0 : i32
    return %arg0, %arg1 : i32, i32
  }
}

</mosaic_0001>

<bundles_post_ra>
// kernel: _lambda_.1
= control target key start
LH: loop header
LB: loop body
LE: loop exit
PB: predicated region body
PF: predicated region fallthrough
CT: control target
= control target key end

     0   :  { %s278_s6 = smov 0   ;;  %s282_s7 = smov 0   ;;  %s306_s0 = inlined_call_operand.vmem [shape: f32[8,256], index: 0, kind: input, shape index: {}]   ;;  %s307_s1 = inlined_call_operand.vmem [shape: f32[8,256], index: 1, kind: output, shape index: {}]  }
   0x1   :  { %s286_s8 = smov 0  }
   0x2 LB: > { %s20_s9 = sadd.s32 1, %s284_s7  ;;  %p237_p0 = scmp.ge.s32.totalorder %s288_s8, 1  ;;  %s288_s8 = sphi %s286_s8, %s11_s8   ;;  %s284_s7 = sphi %s282_s7, %s283_s7   ;;  %s280_s6 = sphi %s278_s6, %s279_s6  }
   0x3   : > { %p21_p1 = scmp.ge.s32.totalorder %s20_s9, 2  ;;  %p106_p2 = scmp.lt.s32.totalorder %s288_s8, 3 }
   0x5   : > { %s309_s9 = smov (%p21_p1, %s20_s9), 0  ;;  %p107_p3 = pnand %p237_p0, %p106_p2 }
   0x6   : > { %p134_p4 = scmp.lt.s32.totalorder (!%p107_p3), %s280_s6, 1 }
   0x7   : > { %110 = sbr.rel (%p107_p3) target bundleno = 19 (0x13), region = 24 }
   0xe   : > { %s311_s6 = smov (!%p134_p4, %s280_s6), 1 }
   0xf   : > { %s238_s10 = sshll.u32 %s311_s6, 3 }
  0x10   : > { %s139_s13 = scalar_lea.vmem %s306_s0, %s238_s10  ;;  %s147_s16 = scalar_lea.vmem %s307_s1, %s238_s10 }
  0x11   : > { %v148_v0 = vld [vmem:[%s139_s13] sm:$0xff] }
  0x12   : > { %149 = vst [vmem:[%s147_s16] sm:$0xff] %v148_v0 }
  0x13 PF: > { %s11_s8 = sadd.s32 1, %s288_s8   ;;  %s279_s6 = smov %s284_s7  }
  0x14   : > { %p8_p5 = scmp.ge.s32.totalorder %s11_s8, 4   ;;  %s283_s7 = smov %s309_s9  }
  0x16   :  { %10 = sbr.rel (!%p8_p5) target bundleno = 2 (0x2), region = 54 }

</bundles_post_ra>
